<compile_context>
chip_gen: v6e
topology: v6e:2x2x1
jax: 0.10.0
libtpu: 0.0.40
codegen_flags: <defaults>
</compile_context>

<pallas_src>
import math

import jax
import jax.numpy as jnp
from jax.experimental import pallas as pl
from jax.experimental.pallas import tpu as pltpu


def _token_embedding_kernel(x_ref, w_ref, o_ref):
    # x_ref: (TR, (pack+2)*c_in) packed rows with [prev | slots | next] columns
    # w_ref: ((pack+2)*c_in, pack*d_model) fused block-banded weight
    # o_ref: (TR, pack*d_model)
    o_ref[...] = jnp.dot(
        x_ref[...], w_ref[...], preferred_element_type=jnp.float32
    ).astype(o_ref.dtype)


def _pack_weight(weight, pack, dtype):
    """weight: (d_model, c_in, 3) PyTorch Conv1d layout -> ((pack+2)*C, pack*D).

    Augmented-row layout along K: [prev halo (C) | slot_0 (C) | ... | slot_{P-1} (C) | next halo (C)]
    Output layout along N:        [slot_0 (D) | ... | slot_{P-1} (D)]
    """
    d_model, c_in, k = weight.shape
    assert k == 3
    w_prev = weight[:, :, 0].T.astype(jnp.float32)   # multiplies x[l-1]
    w_cur = weight[:, :, 1].T.astype(jnp.float32)    # multiplies x[l]
    w_next = weight[:, :, 2].T.astype(jnp.float32)   # multiplies x[l+1]
    K = (pack + 2) * c_in
    PD = pack * d_model
    wb = jnp.zeros((K, PD), jnp.float32)
    # prev halo column block -> output slot 0 via w_prev
    wb = wb.at[:c_in, :d_model].set(w_prev)
    # next halo column block -> output slot pack-1 via w_next
    wb = wb.at[K - c_in:, (pack - 1) * d_model:].set(w_next)
    for p in range(pack):
        r0 = (1 + p) * c_in
        wb = wb.at[r0:r0 + c_in, p * d_model:(p + 1) * d_model].set(w_cur)
        if p + 1 < pack:   # slot p is the "prev" of output slot p+1
            wb = wb.at[r0:r0 + c_in,
                       (p + 1) * d_model:(p + 2) * d_model].set(w_prev)
        if p >= 1:         # slot p is the "next" of output slot p-1
            wb = wb.at[r0:r0 + c_in,
                       (p - 1) * d_model:p * d_model].set(w_next)
    return wb.astype(dtype)


def _choose_tile_rows(total_rows, k_cols, pd_cols, itemsize,
                      max_tile_rows=2048, vmem_budget=20 * 1024 * 1024):
    """Tile size over the flattened packed-row axis (multiple of 8 sublanes)."""
    # Double-buffered input + output blocks per row of the tile.
    per_row = 2 * (k_cols + pd_cols) * itemsize
    cap = max(8, (vmem_budget // max(per_row, 1)) // 8 * 8)
    tr = min(max_tile_rows, cap)
    # Give v7x's 2 TensorCores at least 2 parallel grid steps when possible.
    if total_rows >= 16:
        half = ((total_rows + 1) // 2 + 7) // 8 * 8
        tr = min(tr, max(8, half))
    # Never exceed the (sublane-padded) problem size.
    tr = min(tr, (total_rows + 7) // 8 * 8)
    return max(8, tr)


def token_embedding(x, weight, *, max_tile_rows=2048):
    """Equivalent of TokenEmbedding.forward.

    x:      (B, L, c_in)        (layout the PyTorch forward() receives)
    weight: (d_model, c_in, 3)  PyTorch Conv1d weight layout
    returns (B, L, d_model) in x.dtype
    """
    bsz, seq_len, c_in = x.shape
    d_model, c2, k = weight.shape
    assert c2 == c_in and k == 3

    # Lane-dense packing: pack*d_model is always a multiple of 128.
    pack = 128 // math.gcd(d_model, 128)
    rows = -(-seq_len // pack)            # packed rows per batch (ceil)
    seq_pad = rows * pack - seq_len
    K = (pack + 2) * c_in
    PD = pack * d_model

    # Circular continuation padding so within-row neighbours of the last valid
    # position stay correct; padded positions produce discarded outputs.
    if seq_pad:
        pad_idx = jnp.arange(seq_pad, dtype=jnp.int32) % seq_len
        x_ext = jnp.concatenate([x, jnp.take(x, pad_idx, axis=1)], axis=1)
    else:
        x_ext = x

    # Halo columns: circular prev/next neighbour of each packed row, computed
    # on the ORIGINAL sequence (correct wrap at positions 0 and L-1).
    row_starts = jnp.arange(rows, dtype=jnp.int32) * pack
    prev_idx = (row_starts - 1) % seq_len
    next_idx = (row_starts + pack) % seq_len
    halo_prev = jnp.take(x, prev_idx, axis=1)             # (B, rows, c_in)
    halo_next = jnp.take(x, next_idx, axis=1)             # (B, rows, c_in)

    x_packed = x_ext.reshape(bsz, rows, pack * c_in)
    x_aug = jnp.concatenate([halo_prev, x_packed, halo_next], axis=-1)
    x_flat = x_aug.reshape(bsz * rows, K)                 # flatten batch*rows
    total_rows = bsz * rows

    # Fused weight in the compute dtype (bf16 inputs -> bf16 weights; keep a
    # f32 `weight` argument if f32-weight numerics are required upstream).
    w_big = _pack_weight(weight, pack, x.dtype)

    itemsize = jnp.dtype(x.dtype).itemsize
    tile_rows = _choose_tile_rows(total_rows, K, PD, itemsize, max_tile_rows)
    padded_rows = -(-total_rows // tile_rows) * tile_rows
    if padded_rows != total_rows:
        x_flat = jnp.pad(x_flat, ((0, padded_rows - total_rows), (0, 0)))
    n_tiles = padded_rows // tile_rows

    out = pl.pallas_call(
        _token_embedding_kernel,
        out_shape=jax.ShapeDtypeStruct((padded_rows, PD), x.dtype),
        grid_spec=pltpu.PrefetchScalarGridSpec(
            num_scalar_prefetch=0,
            grid=(n_tiles,),
            in_specs=[
                pl.BlockSpec((tile_rows, K), lambda t: (t, 0)),
                pl.BlockSpec((K, PD), lambda t: (0, 0)),
            ],
            out_specs=pl.BlockSpec((tile_rows, PD), lambda t: (t, 0)),
        ),
        compiler_params=pltpu.CompilerParams(
            dimension_semantics=("parallel",),
            vmem_limit_bytes=48 * 1024 * 1024,
        ),
    )(x_flat, w_big)

    out = out[:total_rows].reshape(bsz, rows * pack, d_model)
    return out[:, :seq_len, :]


def token_embedding_ref(x, weight):
    """Pure-JAX reference of the circular k=3 conv (PyTorch semantics)."""
    xf = x.astype(jnp.float32)
    w_prev = weight[:, :, 0].T.astype(jnp.float32)
    w_cur = weight[:, :, 1].T.astype(jnp.float32)
    w_next = weight[:, :, 2].T.astype(jnp.float32)
    return (jnp.roll(xf, 1, axis=1) @ w_prev
            + xf @ w_cur
            + jnp.roll(xf, -1, axis=1) @ w_next)


if __name__ == "__main__":
    c_in, d_model = 4, 32
    batch, seq_len = 2, 64

    key = jax.random.PRNGKey(0)
    k_w, k_x = jax.random.split(key)

    # Kaiming-normal init (mode='fan_in', nonlinearity='leaky_relu'), as in the module.
    fan_in = c_in * 3
    std = math.sqrt(2.0) / math.sqrt(fan_in)
    # PyTorch Conv1d weight layout: (d_model, c_in, kernel=3)
    weight = jax.random.normal(k_w, (d_model, c_in, 3), dtype=jnp.float32) * std
    x = jax.random.normal(k_x, (batch, seq_len, c_in), dtype=jnp.float32)

    ref = token_embedding_ref(x, weight)

    # float32 path (matches the PyTorch module's numerics).
    out = jax.block_until_ready(token_embedding(x, weight))
    assert out.shape == (batch, seq_len, d_model)
    assert jnp.allclose(out, ref, atol=1e-4, rtol=1e-4), "f32 mismatch vs reference"

    # bf16 I/O path (kernel is HBM-bound: ~2x less traffic; f32 accumulation in the dot).
    out_bf16 = jax.block_until_ready(token_embedding(x.astype(jnp.bfloat16), weight))
    assert out_bf16.dtype == jnp.bfloat16
    assert jnp.allclose(out_bf16.astype(jnp.float32), ref, atol=1e-1, rtol=1e-1), \
        "bf16 mismatch vs reference"

    # Odd-length sequence path (circular padding + output slice, still lane-dense).
    x_odd = x[:, :seq_len - 3, :]
    out_odd = jax.block_until_ready(token_embedding(x_odd, weight))
    assert jnp.allclose(out_odd, token_embedding_ref(x_odd, weight),
                        atol=1e-4, rtol=1e-4), "odd-length mismatch vs reference"

    print("KERNEL_OK")
</pallas_src>

<mosaic_0001>
module attributes {stable_mosaic.version = 11 : i64} {
  func.func @_token_embedding_kernel(%arg0: i32, %arg1: memref<16x24xf32, #tpu.memory_space<vmem>>, %arg2: memref<24x128xf32, #tpu.memory_space<vmem>>, %arg3: memref<16x128xf32, #tpu.memory_space<vmem>>) attributes {dimension_semantics = [#tpu.dimension_semantics<parallel>], iteration_bounds = array<i64: 2>, scalar_prefetch = 0 : i64, scratch_operands = 0 : i64, tpu.core_type = #tpu.core_type<tc>, window_params = [{transform_indices = @transform_0, window_bounds = array<i64: 16, 24>}, {pipeline_mode = #tpu.pipeline_mode<synchronous>, transform_indices = @transform_1, window_bounds = array<i64: 24, 128>}, {transform_indices = @transform_2, window_bounds = array<i64: 16, 128>}]} {
    %c0 = arith.constant 0 : index
    %c0_0 = arith.constant 0 : index
    %0 = vector.load %arg1[%c0, %c0_0] : memref<16x24xf32, #tpu.memory_space<vmem>>, vector<16x24xf32>
    %c0_1 = arith.constant 0 : index
    %c0_2 = arith.constant 0 : index
    %1 = vector.load %arg2[%c0_1, %c0_2] : memref<24x128xf32, #tpu.memory_space<vmem>>, vector<24x128xf32>
    %cst = arith.constant dense<0.000000e+00> : vector<16x128xf32>
    %2 = tpu.matmul %0, %1, %cst {dimension_numbers = #tpu.dot_dimension_numbers<[1], [0], [0], [1], [0, 0, 1, 1], [], []>} : vector<16x24xf32>, vector<24x128xf32>, vector<16x128xf32> -> vector<16x128xf32>
    %c0_3 = arith.constant 0 : index
    %c0_4 = arith.constant 0 : index
    %3 = vector.load %arg3[%c0_3, %c0_4] : memref<16x128xf32, #tpu.memory_space<vmem>>, vector<16x128xf32>
    tpu.vector_store %arg3[%c0_3, %c0_4], %2 {strides = array<i32>} : memref<16x128xf32, #tpu.memory_space<vmem>>, vector<16x128xf32>,
    return
  }
  func.func @transform_0(%arg0: i32) -> (i32, i32) {
    %c0_i32 = arith.constant 0 : i32
    %c0_i32_0 = arith.constant 0 : i32
    return %arg0, %c0_i32 : i32, i32
  }
  func.func @transform_1(%arg0: i32) -> (i32, i32) {
    %c0_i32 = arith.constant 0 : i32
    %c0_i32_0 = arith.constant 0 : i32
    %c0_i32_1 = arith.constant 0 : i32
    return %c0_i32, %c0_i32_0 : i32, i32
  }
  func.func @transform_2(%arg0: i32) -> (i32, i32) {
    %c0_i32 = arith.constant 0 : i32
    %c0_i32_0 = arith.constant 0 : i32
    return %arg0, %c0_i32 : i32, i32
  }
}

</mosaic_0001>

<bundles_post_ra>
// kernel: tpu_custom_call.1
= control target key start
LH: loop header
LB: loop body
LE: loop exit
PB: predicated region body
PF: predicated region fallthrough
CT: control target
= control target key end

     0   :  { %7 = vsyncpa [#allocation3], 0  ;;  %s570_s0 = inlined_call_operand.vmem [shape: f32[32,24], index: 0, kind: input, shape index: {}]   ;;  %s571_s1 = inlined_call_operand.vmem [shape: f32[24,128], index: 1, kind: input, shape index: {}]   ;;  %s572_s2 = inlined_call_operand.hbm [shape: f32[32,128], index: 2, kind: output, shape index: {}]  }
   0x1   :  { %9 = vsyncpa [#allocation3 + $0x1], 0  ;;  %s460_s9 = smov 0   ;;  %s462_s10 = smov 0  }
   0x2   :  { %s464_s11 = smov 0   ;;  %s466_s12 = smov 0  }
   0x3 LB: > { %s481_s13 = sadd.s32 4294967295, %s440_s12   ;;  %s310_s14 = sadd.s32 4294967294, %s440_s12   ;;  %s440_s12 = sphi %s466_s12, %s578_s12   ;;  %s436_s11 = sphi %s464_s11, %s577_s11   ;;  %s432_s10 = sphi %s462_s10, %s576_s10   ;;  %s428_s9 = sphi %s460_s9, %s575_s9  }
   0x4   : > { %s485_s15 = sadd.s32 1, %s440_s12   ;;  %s69_s16 = sadd.s32 1, %s436_s11 }
   0x5   : > { %s66_s17 = ssub.s32 %s440_s12, %s485_s15  ;;  %p79_p0 = scmp.ne.s32.totalorder %s436_s11, %s432_s10 }
   0x6   : > { %p67_p1 = scmp.eq.s32.totalorder %s66_s17, 0  ;;  %p80_p2 = scmp.eq.s32.totalorder %s481_s13, 1 }
   0x7   : > { %p85_p3 = scmp.ne.s32.totalorder %s432_s10, %s428_s9  ;;  %p86_p4 = scmp.eq.s32.totalorder %s310_s14, 1 }
   0x8   : > { %s496_s18 = scalar_select %p67_p1, %s436_s11, %s69_s16  }
   0x9   : > { %p498_p5 = por %p80_p2, %p79_p0  ;;  %p502_p6 = por %p86_p4, %p85_p3 }
   0xa   : > { %p313_p7 = scmp.ge.s32.totalorder %s440_s12, 1  ;;  %p116_p8 = scmp.lt.s32.totalorder %s440_s12, 3 }
   0xc   : > { %p117_p9 = pnand %p313_p7, %p116_p8 }
   0xd   : > { %s315_s25 = sshll.u32 (!%p117_p9), %s481_s13, 1  ;;  %s135_s4 = sand.u32 (!%p117_p9), 1, %s432_s10  }
   0xe   : > { %120 = sbr.rel (%p117_p9) target bundleno = 235 (0xeb), region = 28  ;;  %p139_p10 = scmp.lt.s32.totalorder (!%p117_p9), %s315_s25, 3 }
   0xf   : > { %s314_s5 = sshll.u32 (!%p117_p9), %s135_s4, 4  ;;  %s324_s8 = sshll.u32 (!%p117_p9), %s481_s13, 8 }
  0x10   : > { %s137_s6 = scalar_lea.vmem (!%p117_p9), [#allocation2], %s314_s5  ;;  %s528_s17 = scalar_lea.hbm (!%p117_p9), %s572_s2, %s324_s8 }
  0x11   : > { %s248_s7 = sshll.u32 (!%p117_p9), %s137_s6, 4  ;;  %s530_s21 = scalar_lea.sflag (!%p117_p9), [#allocation3], %s135_s4  ;;  %s523_s7 = int_to_ptr.vmem [resolvable:$true] %s248_s7 }
  0x12   : > { %s380_s22 = scalar_lea.vmem (!%p117_p9), %s523_s7, 256  ;;  %s442_s13 = smov (!%p117_p9), [#allocation2]  }
  0x13   : > { %v149_v0 = vld [vmem:[%s571_s1 + $0x10] sm:$0xff]  ;;  %v148_v1 = vld [vmem:[%s571_s1 + $0x8] sm:$0xff]  ;;  %v147_v2 = vld [vmem:[%s571_s1] sm:$0xff]  ;;  %s580_s25 = smov (!%p139_p10, %s315_s25), 3  ;;  %vm150_vm0 = vcmask 195584   ;;  %p381_p11 = scmp.ne.s32.totalorder %s523_s7, %s380_s22 }
  0x14   : > { %330 = vmatprep.subr.mxu0 %v149_v0  ;;  %s316_s28 = sshll.u32 %s580_s25, 3  ;;  %s384_s23 = sshll.u32 %s442_s13, 4  ;;  %s385_s23 = int_to_ptr.vmem [resolvable:$false] %s384_s23 }
  0x15   : > { %331 = vmatpush3.msra.mxu0 %v149_v0  ;;  %s142_s3 = scalar_lea.vmem %s570_s0, %s316_s28  ;;  %p382_p12 = pnand %p381_p11, %p498_p5 }
  0x16   : > { %332 = vmatprep.subr.mxu0 %v148_v1  ;;  %v145_v3 = vld [vmem:[%s142_s3] sm:$0xff]  ;;  %v146_v4 = vld [vmem:[%s142_s3 + $0x8] sm:$0xff]  ;;  %s386_s24 = scalar_lea.vmem %s385_s23, 512  ;;  %p387_p0 = scmp.lt.s32.totalorder %s523_s7, %s385_s23 }
  0x17   : > { %333 = vmatpush3.msra.mxu0 %v148_v1  ;;  %336 = vmatprep.mubr.msk.f32.mxu0 %vm150_vm0, %v145_v3  ;;  %p383_p13 = pneg %p382_p12  ;;  %p388_p1 = scmp.lt.s32.totalorder %s386_s24, %s380_s22 }
  0x18   : > { %334 = vmatprep.subr.mxu0 %v147_v2 }
  0x19   : > { %335 = vmatpush3.msra.mxu0 %v147_v2  ;;  %p389_p2 = por %p388_p1, %p387_p0 }
  0x1a   : > { %337 = vmatmul.mubr.msk.f32.vlgmr.msra.gmra.mxu0 %vm150_vm0, %v146_v4 }
  0x1b   : > { %p390_p3 = pnand %p389_p2, %p383_p13 }
  0xda   : > { %v338_v5 = vpop.f32.mrf.mxu0 }
  0xdb   : > { %233 = vst [vmem:[%s137_s6 + $0x8] sm:$0xff] %v338_v5 }
  0xdc   : > { %v223_v6 = vpop.f32.mrf.mxu0 }
  0xdd   : > { %232 = vst [vmem:[%s137_s6] sm:$0xff] %v223_v6 }
  0xde   : > { %393 = shalt.err (!%p390_p3)
}
  0xdf   : > { %s394_s25 = scalar_lea.hbm %s528_s17, 256  ;;  %s398_s28 = scalar_lea.hbm %s572_s2, 512 }
  0xe0   : > { %p395_p4 = scmp.ne.s32.totalorder %s528_s17, %s394_s25  ;;  %p399_p9 = scmp.lt.s32.totalorder %s528_s17, %s572_s2 }
  0xe1   : > { %p400_p10 = scmp.lt.s32.totalorder %s398_s28, %s394_s25 }
  0xe2   : > { %p396_p7 = pnand %p395_p4, %p498_p5 }
  0xe3   : > { %p401_p11 = por %p400_p10, %p399_p9 }
  0xe4   : > { %p397_p8 = pneg %p396_p7 }
  0xe6   : > { %p402_p12 = pnand %p401_p11, %p397_p8 }
  0xe8   : > { %405 = shalt.err (!%p402_p12)
}
  0xe9   : > { %s443_s3 = smov 128   ;;  %s444_s4 = smov 8  }
  0xea   : > { %339 = dma.vmem_to_hbm [thread:$0]  (%p498_p5), %s523_s7, 256, %s528_s17, %s530_s21, %s443_s3, %s443_s3, %s444_s4  }
  0xeb PF: > { %p345_p13 = scmp.ge.s32.totalorder %s440_s12, 2  ;;  %s263_s5 = sand.u32 1, %s428_s9  }
  0xec   : > { %s264_s6 = scalar_lea.sflag [#allocation3], %s263_s5 }
  0xed   : > { %p342_p0 = pnand %p345_p13, %p502_p6 }
  0xef   : > { %p343_p1 = pneg %p342_p0 }
  0xf1   : > { %423 = dma.done.wait (%p343_p1), %s264_s6, 256  }
  0xf2   : > { %425 = vsyncadd (%p343_p1), %s264_s6, 4294967040  ;;  %p12_p2 = scmp.ge.s32.totalorder %s485_s15, 4   ;;  %s575_s9 = smov %s432_s10 }
  0xf3   : > { %s576_s10 = smov %s436_s11  ;;  %s577_s11 = smov %s496_s18 }
  0xf4   : > { %s578_s12 = smov %s485_s15  ;;  %14 = sbr.rel (!%p12_p2) target bundleno = 3 (0x3), region = 63 }
  0xf9   :  { %269 = vsyncpa [#allocation3], 1 }
  0xfa   :  { %271 = vsyncpa [#allocation3 + $0x1], 1 }

</bundles_post_ra>
